<compile_context>
chip_gen: v7x
topology: tpu7x:2x2x1
jax: 0.10.0
libtpu: 0.0.40
codegen_flags: <defaults>
</compile_context>

<pallas_src>
import math
import functools

import jax
import jax.numpy as jnp
from jax.experimental import pallas as pl
from jax.experimental.pallas import tpu as pltpu

D_MODEL = 32
HEADS = 4
D_FF = 64
DIM_HEAD = D_MODEL // HEADS
EPS = 1e-6


def _layer_norm(x, gamma, beta):
    mu = jnp.mean(x, axis=-1, keepdims=True)
    var = jnp.mean((x - mu) ** 2, axis=-1, keepdims=True)
    return (x - mu) * jax.lax.rsqrt(var + EPS) * gamma + beta


def _gelu(x):
    # PreSumm's tanh-approx gelu
    return 0.5 * x * (1.0 + jnp.tanh(math.sqrt(2.0 / math.pi) * (x + 0.044715 * x ** 3)))


def encoder_layer_kernel(
        x_ref, mask_ref, wqkv_ref, wo_ref, w1_ref, w2_ref, vec_ref, o_ref,
        *, apply_input_norm, bb, seq):
    d = D_MODEL
    x = x_ref[...]                                   # (bb*seq, d)

    # Packed small parameters: rows are zero-padded to 3*d lanes.
    vecs = vec_ref[...]                              # (8, 3d)
    ln_g, ln_b = vecs[0:1, :d], vecs[1:2, :d]
    bo = vecs[2:3, :d]
    ff_g, ff_b = vecs[3:4, :d], vecs[4:5, :d]
    b2 = vecs[5:6, :d]
    b1 = vecs[6:7, :D_FF]
    b_qkv = vecs[7:8, :]                             # (1, 3d)

    x_norm = _layer_norm(x, ln_g, ln_b) if apply_input_norm else x

    # Fused QKV projection: one (bb*seq, d) @ (d, 3d) MXU matmul.
    qkv = jnp.dot(x_norm, wqkv_ref[...], preferred_element_type=jnp.float32) + b_qkv

    scale = 1.0 / math.sqrt(DIM_HEAD)
    q = (qkv[:, 0:d] * scale).reshape(bb, seq, d)
    k = qkv[:, d:2 * d].reshape(bb, seq, d)
    v = qkv[:, 2 * d:3 * d].reshape(bb, seq, d)

    # Key-padding mask -> additive bias, computed once per block (hoisted out
    # of the head loop).  1.0 == padded key, matching masked_fill(mask, -1e18).
    mask_bias = jnp.where(mask_ref[...] > 0.5, -1e18, 0.0)      # (bb, 1, seq)

    # Per-head attention (HEADS is a small compile-time constant); contexts
    # are concatenated so the output projection is a single matmul with Wo.
    ctx_heads = []
    for h in range(HEADS):
        sl = slice(h * DIM_HEAD, (h + 1) * DIM_HEAD)
        scores = jnp.einsum('bqd,bkd->bqk', q[..., sl], k[..., sl],
                            preferred_element_type=jnp.float32)  # (bb, seq, seq)
        scores = scores + mask_bias
        m = jnp.max(scores, axis=-1, keepdims=True)
        e = jnp.exp(scores - m)
        denom = jnp.sum(e, axis=-1, keepdims=True)
        attn = e * pl.reciprocal(denom, approx=True)             # EUP divide
        # TODO(synk): attention dropout is identity in eval mode, so it is omitted.
        ctx_heads.append(jnp.einsum('bqk,bkd->bqd', attn, v[..., sl],
                                    preferred_element_type=jnp.float32))
    ctx = jnp.concatenate(ctx_heads, axis=-1).reshape(bb * seq, d)

    attn_out = jnp.dot(ctx, wo_ref[...], preferred_element_type=jnp.float32) + bo
    out = attn_out + x                                # residual (dropout == identity)

    # PositionwiseFeedForward: LN -> W1 -> gelu -> W2 -> + residual
    h1 = _layer_norm(out, ff_g, ff_b)
    inter = _gelu(jnp.dot(h1, w1_ref[...], preferred_element_type=jnp.float32) + b1)
    y = jnp.dot(inter, w2_ref[...], preferred_element_type=jnp.float32) + b2
    o_ref[...] = y + out


def _choose_block_batch(B, S, target_rows=256):
    """Pick Bb (batch elements per grid step) so Bb*S fills the MXU M dim
    (>=256 rows on v6e/v7x, >=128 already saturates v5e), preferring to keep
    >= 2 parallel grid steps so both v7x TensorCores get work."""
    bb = B
    for d in range(1, B + 1):
        if B % d:
            continue
        bb = d
        if d * S >= target_rows:
            break
    if B // bb < 2:
        for d in range(bb - 1, 0, -1):
            if B % d == 0 and B // d >= 2 and d * S >= target_rows:
                return d
    return bb


def transformer_encoder_layer(it, inputs, mask, p, *, block_batch=None):
    """it: python int (iter). inputs: [B,S,D] f32. mask: [B,S] f32 (1.0 = pad)."""
    B, S, D = inputs.shape
    assert D == D_MODEL
    Bb = _choose_block_batch(B, S) if block_batch is None else block_batch
    assert B % Bb == 0
    # (Bb*S, D) block: second-minor dim must be a multiple of 8 or the full dim.
    if (Bb * S) % 8 != 0 and Bb != B:
        Bb = B
    grid = (B // Bb,)
    N = Bb * S

    # Lane-dense contiguous activation slabs (single large DMA per grid step).
    x_flat = inputs.reshape(B * S, D)
    mask3 = mask.reshape(B, 1, S).astype(jnp.float32)

    # Fused QKV weight / bias, and all tiny vectors packed into one operand.
    w_qkv = jnp.concatenate([p["wq"], p["wk"], p["wv"]], axis=1)        # (D, 3D)
    b_qkv = jnp.concatenate([p["bq"], p["bk"], p["bv"]], axis=1)        # (1, 3D)

    def pad3d(v):
        return jnp.pad(v, ((0, 0), (0, 3 * D - v.shape[1])))
    vecs = jnp.concatenate([
        pad3d(p["ln_g"]), pad3d(p["ln_b"]), pad3d(p["bo"]),
        pad3d(p["ff_ln_g"]), pad3d(p["ff_ln_b"]), pad3d(p["b2"]),
        pad3d(p["b1"]), b_qkv,
    ], axis=0)                                                           # (8, 3D)

    kernel = functools.partial(encoder_layer_kernel,
                               apply_input_norm=(it != 0), bb=Bb, seq=S)

    out_flat = pl.pallas_call(
        kernel,
        out_shape=jax.ShapeDtypeStruct((B * S, D), jnp.float32),
        grid=grid,
        in_specs=[
            pl.BlockSpec((N, D), lambda i: (i, 0)),          # activations slab
            pl.BlockSpec((Bb, 1, S), lambda i: (i, 0, 0)),   # key-padding mask
            pl.BlockSpec((D, 3 * D), lambda i: (0, 0)),      # fused Wqkv
            pl.BlockSpec((D, D), lambda i: (0, 0)),          # Wo
            pl.BlockSpec((D, D_FF), lambda i: (0, 0)),       # W1
            pl.BlockSpec((D_FF, D), lambda i: (0, 0)),       # W2
            pl.BlockSpec((8, 3 * D), lambda i: (0, 0)),      # packed small vectors
        ],
        out_specs=pl.BlockSpec((N, D), lambda i: (i, 0)),
        compiler_params=pltpu.CompilerParams(dimension_semantics=("parallel",)),
    )(x_flat, mask3, w_qkv, p["wo"], p["w1"], p["w2"], vecs)

    return out_flat.reshape(B, S, D)


def reference(it, inputs, mask, p):
    """Pure-JAX reference mirroring the PyTorch forward."""
    def ln(x, g, b):
        mu = x.mean(-1, keepdims=True)
        var = ((x - mu) ** 2).mean(-1, keepdims=True)
        return (x - mu) / jnp.sqrt(var + EPS) * g + b

    B, S, D = inputs.shape
    x = inputs
    xn = ln(x, p["ln_g"], p["ln_b"]) if it != 0 else x
    q = xn @ p["wq"] + p["bq"]
    k = xn @ p["wk"] + p["bk"]
    v = xn @ p["wv"] + p["bv"]
    qh = q.reshape(B, S, HEADS, DIM_HEAD).transpose(0, 2, 1, 3)
    kh = k.reshape(B, S, HEADS, DIM_HEAD).transpose(0, 2, 1, 3)
    vh = v.reshape(B, S, HEADS, DIM_HEAD).transpose(0, 2, 1, 3)
    scores = (qh / math.sqrt(DIM_HEAD)) @ kh.transpose(0, 1, 3, 2)
    mask4 = mask[:, None, None, :]
    scores = jnp.where(mask4 > 0.5, -1e18, scores)
    attn = jax.nn.softmax(scores, axis=-1)
    ctx = (attn @ vh).transpose(0, 2, 1, 3).reshape(B, S, D)
    attn_out = ctx @ p["wo"] + p["bo"]
    out = attn_out + x
    h1 = ln(out, p["ff_ln_g"], p["ff_ln_b"])
    inter = _gelu(h1 @ p["w1"] + p["b1"])
    return inter @ p["w2"] + p["b2"] + out


def init_params(key):
    keys = jax.random.split(key, 12)
    n = lambda k, shape: (0.02 * jax.random.normal(k, shape)).astype(jnp.float32)
    return {
        "ln_g": jnp.ones((1, D_MODEL), jnp.float32),
        "ln_b": jnp.zeros((1, D_MODEL), jnp.float32),
        "wq": n(keys[0], (D_MODEL, D_MODEL)), "bq": n(keys[1], (1, D_MODEL)),
        "wk": n(keys[2], (D_MODEL, D_MODEL)), "bk": n(keys[3], (1, D_MODEL)),
        "wv": n(keys[4], (D_MODEL, D_MODEL)), "bv": n(keys[5], (1, D_MODEL)),
        "wo": n(keys[6], (D_MODEL, D_MODEL)), "bo": n(keys[7], (1, D_MODEL)),
        "ff_ln_g": jnp.ones((1, D_MODEL), jnp.float32),
        "ff_ln_b": jnp.zeros((1, D_MODEL), jnp.float32),
        "w1": n(keys[8], (D_MODEL, D_FF)), "b1": n(keys[9], (1, D_FF)),
        "w2": n(keys[10], (D_FF, D_MODEL)), "b2": n(keys[11], (1, D_MODEL)),
    }


if __name__ == "__main__":
    B, S = 2, 8
    key = jax.random.PRNGKey(0)
    k_x, k_p = jax.random.split(key)
    inputs = jax.random.normal(k_x, (B, S, D_MODEL), dtype=jnp.float32)
    # batch 0: no padding; batch 1: last 3 positions masked
    lengths = jnp.array([S, S - 3])
    mask = (jnp.arange(S)[None, :] >= lengths[:, None]).astype(jnp.float32)  # [B, S]
    params = init_params(k_p)

    for it in (1, 0):  # iter != 0 applies the input LayerNorm; iter == 0 skips it
        out = transformer_encoder_layer(it, inputs, mask, params)
        out = jax.block_until_ready(out)
        ref = reference(it, inputs, mask, params)
        assert out.shape == (B, S, D_MODEL)
        # 2e-3 tolerance: the only extra deviation vs the exact reference comes
        # from the EUP approximate reciprocal used in the softmax normalization.
        assert jnp.allclose(out, ref, rtol=2e-3, atol=2e-3), f"mismatch (iter={it})"
    print("KERNEL_OK")
</pallas_src>

<mosaic_0001>
module attributes {stable_mosaic.version = 11 : i64} {
  func.func @encoder_layer_kernel(%arg0: i32, %arg1: memref<16x32xf32, #tpu.memory_space<vmem>>, %arg2: memref<2x1x8xf32, #tpu.memory_space<vmem>>, %arg3: memref<32x96xf32, #tpu.memory_space<vmem>>, %arg4: memref<32x32xf32, #tpu.memory_space<vmem>>, %arg5: memref<32x64xf32, #tpu.memory_space<vmem>>, %arg6: memref<64x32xf32, #tpu.memory_space<vmem>>, %arg7: memref<8x96xf32, #tpu.memory_space<vmem>>, %arg8: memref<16x32xf32, #tpu.memory_space<vmem>>) attributes {dimension_semantics = [#tpu.dimension_semantics<parallel>], iteration_bounds = array<i64: 1>, scalar_prefetch = 0 : i64, scratch_operands = 0 : i64, tpu.core_type = #tpu.core_type<tc>, window_params = [{transform_indices = @transform_0, window_bounds = array<i64: 16, 32>}, {transform_indices = @transform_1, window_bounds = array<i64: 2, 1, 8>}, {pipeline_mode = #tpu.pipeline_mode<synchronous>, transform_indices = @transform_2, window_bounds = array<i64: 32, 96>}, {pipeline_mode = #tpu.pipeline_mode<synchronous>, transform_indices = @transform_3, window_bounds = array<i64: 32, 32>}, {pipeline_mode = #tpu.pipeline_mode<synchronous>, transform_indices = @transform_4, window_bounds = array<i64: 32, 64>}, {pipeline_mode = #tpu.pipeline_mode<synchronous>, transform_indices = @transform_5, window_bounds = array<i64: 64, 32>}, {pipeline_mode = #tpu.pipeline_mode<synchronous>, transform_indices = @transform_6, window_bounds = array<i64: 8, 96>}, {transform_indices = @transform_7, window_bounds = array<i64: 16, 32>}]} {
    %c0 = arith.constant 0 : index
    %c0_0 = arith.constant 0 : index
    %0 = vector.load %arg1[%c0, %c0_0] : memref<16x32xf32, #tpu.memory_space<vmem>>, vector<16x32xf32>
    %c0_1 = arith.constant 0 : index
    %c0_2 = arith.constant 0 : index
    %1 = vector.load %arg7[%c0_1, %c0_2] : memref<8x96xf32, #tpu.memory_space<vmem>>, vector<8x96xf32>
    %2 = vector.extract_strided_slice %1 {offsets = [0, 0], sizes = [1, 32], strides = [1, 1]} : vector<8x96xf32> to vector<1x32xf32>
    %3 = vector.extract_strided_slice %1 {offsets = [1, 0], sizes = [1, 32], strides = [1, 1]} : vector<8x96xf32> to vector<1x32xf32>
    %4 = vector.extract_strided_slice %1 {offsets = [2, 0], sizes = [1, 32], strides = [1, 1]} : vector<8x96xf32> to vector<1x32xf32>
    %5 = vector.extract_strided_slice %1 {offsets = [3, 0], sizes = [1, 32], strides = [1, 1]} : vector<8x96xf32> to vector<1x32xf32>
    %6 = vector.extract_strided_slice %1 {offsets = [4, 0], sizes = [1, 32], strides = [1, 1]} : vector<8x96xf32> to vector<1x32xf32>
    %7 = vector.extract_strided_slice %1 {offsets = [5, 0], sizes = [1, 32], strides = [1, 1]} : vector<8x96xf32> to vector<1x32xf32>
    %8 = vector.extract_strided_slice %1 {offsets = [6, 0], sizes = [1, 64], strides = [1, 1]} : vector<8x96xf32> to vector<1x64xf32>
    %9 = vector.extract_strided_slice %1 {offsets = [7, 0], sizes = [1, 96], strides = [1, 1]} : vector<8x96xf32> to vector<1x96xf32>
    %cst = arith.constant dense<0.000000e+00> : vector<16xf32>
    %10 = vector.multi_reduction <add>, %0, %cst [1] : vector<16x32xf32> to vector<16xf32>
    %11 = vector.shape_cast %10 : vector<16xf32> to vector<16x1xf32>
    %cst_3 = arith.constant 3.200000e+01 : f32
    %12 = vector.broadcast %cst_3 : f32 to vector<16x1xf32>
    %13 = arith.divf %11, %12 : vector<16x1xf32>
    %14 = vector.broadcast %13 : vector<16x1xf32> to vector<16x32xf32>
    %15 = arith.subf %0, %14 : vector<16x32xf32>
    %16 = arith.mulf %15, %15 : vector<16x32xf32>
    %cst_4 = arith.constant dense<0.000000e+00> : vector<16xf32>
    %17 = vector.multi_reduction <add>, %16, %cst_4 [1] : vector<16x32xf32> to vector<16xf32>
    %18 = vector.shape_cast %17 : vector<16xf32> to vector<16x1xf32>
    %cst_5 = arith.constant 3.200000e+01 : f32
    %19 = vector.broadcast %cst_5 : f32 to vector<16x1xf32>
    %20 = arith.divf %18, %19 : vector<16x1xf32>
    %21 = vector.broadcast %13 : vector<16x1xf32> to vector<16x32xf32>
    %22 = arith.subf %0, %21 : vector<16x32xf32>
    %cst_6 = arith.constant 9.99999997E-7 : f32
    %23 = vector.broadcast %cst_6 : f32 to vector<16x1xf32>
    %24 = arith.addf %20, %23 : vector<16x1xf32>
    %25 = math.rsqrt %24 : vector<16x1xf32>
    %26 = vector.broadcast %25 : vector<16x1xf32> to vector<16x32xf32>
    %27 = arith.mulf %22, %26 : vector<16x32xf32>
    %28 = vector.broadcast %2 : vector<1x32xf32> to vector<16x32xf32>
    %29 = arith.mulf %27, %28 : vector<16x32xf32>
    %30 = vector.broadcast %3 : vector<1x32xf32> to vector<16x32xf32>
    %31 = arith.addf %29, %30 : vector<16x32xf32>
    %c0_7 = arith.constant 0 : index
    %c0_8 = arith.constant 0 : index
    %32 = vector.load %arg3[%c0_7, %c0_8] : memref<32x96xf32, #tpu.memory_space<vmem>>, vector<32x96xf32>
    %cst_9 = arith.constant dense<0.000000e+00> : vector<16x96xf32>
    %33 = tpu.matmul %31, %32, %cst_9 {dimension_numbers = #tpu.dot_dimension_numbers<[1], [0], [0], [1], [0, 0, 1, 1], [], []>} : vector<16x32xf32>, vector<32x96xf32>, vector<16x96xf32> -> vector<16x96xf32>
    %34 = vector.broadcast %9 : vector<1x96xf32> to vector<16x96xf32>
    %35 = arith.addf %33, %34 : vector<16x96xf32>
    %36 = vector.extract_strided_slice %35 {offsets = [0, 0], sizes = [16, 32], strides = [1, 1]} : vector<16x96xf32> to vector<16x32xf32>
    %cst_10 = arith.constant 0.353553385 : f32
    %37 = vector.broadcast %cst_10 : f32 to vector<16x32xf32>
    %38 = arith.mulf %36, %37 : vector<16x32xf32>
    %39 = vector.shape_cast %38 : vector<16x32xf32> to vector<2x8x32xf32>
    %40 = vector.extract_strided_slice %35 {offsets = [0, 32], sizes = [16, 32], strides = [1, 1]} : vector<16x96xf32> to vector<16x32xf32>
    %41 = vector.shape_cast %40 : vector<16x32xf32> to vector<2x8x32xf32>
    %42 = vector.extract_strided_slice %35 {offsets = [0, 64], sizes = [16, 32], strides = [1, 1]} : vector<16x96xf32> to vector<16x32xf32>
    %43 = vector.shape_cast %42 : vector<16x32xf32> to vector<2x8x32xf32>
    %c0_11 = arith.constant 0 : index
    %c0_12 = arith.constant 0 : index
    %c0_13 = arith.constant 0 : index
    %44 = vector.load %arg2[%c0_11, %c0_12, %c0_13] : memref<2x1x8xf32, #tpu.memory_space<vmem>>, vector<2x1x8xf32>
    %cst_14 = arith.constant 5.000000e-01 : f32
    %45 = vector.broadcast %cst_14 : f32 to vector<2x1x8xf32>
    %46 = arith.cmpf ogt, %44, %45 : vector<2x1x8xf32>
    %cst_15 = arith.constant -9.99999984E+17 : f32
    %cst_16 = arith.constant 0.000000e+00 : f32
    %47 = vector.broadcast %cst_15 : f32 to vector<2x1x8xf32>
    %48 = vector.broadcast %cst_16 : f32 to vector<2x1x8xf32>
    %49 = arith.select %46, %47, %48 : vector<2x1x8xi1>, vector<2x1x8xf32>
    %50 = vector.extract_strided_slice %39 {offsets = [0, 0, 0], sizes = [2, 8, 8], strides = [1, 1, 1]} : vector<2x8x32xf32> to vector<2x8x8xf32>
    %51 = vector.extract_strided_slice %41 {offsets = [0, 0, 0], sizes = [2, 8, 8], strides = [1, 1, 1]} : vector<2x8x32xf32> to vector<2x8x8xf32>
    "tpu.trace_start"() <{level = 10 : i32, message = "bqd,bkd->bqk"}> : () -> ()
    %cst_17 = arith.constant dense<0.000000e+00> : vector<2x8x8xf32>
    %52 = tpu.matmul %50, %51, %cst_17 {dimension_numbers = #tpu.dot_dimension_numbers<[2], [2], [1], [1], [0, 0, 0, 1, 1, 1], [0], [0]>} : vector<2x8x8xf32>, vector<2x8x8xf32>, vector<2x8x8xf32> -> vector<2x8x8xf32>
    "tpu.trace_stop"() : () -> ()
    %53 = vector.broadcast %49 : vector<2x1x8xf32> to vector<2x8x8xf32>
    %54 = arith.addf %52, %53 : vector<2x8x8xf32>
    %cst_18 = arith.constant dense<0xFF800000> : vector<2x8xf32>
    %55 = vector.multi_reduction <maximumf>, %54, %cst_18 [2] : vector<2x8x8xf32> to vector<2x8xf32>
    %56 = vector.shape_cast %55 : vector<2x8xf32> to vector<2x8x1xf32>
    %57 = vector.broadcast %56 : vector<2x8x1xf32> to vector<2x8x8xf32>
    %58 = arith.subf %54, %57 : vector<2x8x8xf32>
    %59 = math.exp %58 : vector<2x8x8xf32>
    %cst_19 = arith.constant dense<0.000000e+00> : vector<2x8xf32>
    %60 = vector.multi_reduction <add>, %59, %cst_19 [2] : vector<2x8x8xf32> to vector<2x8xf32>
    %61 = vector.shape_cast %60 : vector<2x8xf32> to vector<2x8x1xf32>
    %62 = tpu.reciprocal %61 {approx = true} : vector<2x8x1xf32> -> vector<2x8x1xf32>
    %63 = vector.broadcast %62 : vector<2x8x1xf32> to vector<2x8x8xf32>
    %64 = arith.mulf %59, %63 : vector<2x8x8xf32>
    %65 = vector.extract_strided_slice %43 {offsets = [0, 0, 0], sizes = [2, 8, 8], strides = [1, 1, 1]} : vector<2x8x32xf32> to vector<2x8x8xf32>
    "tpu.trace_start"() <{level = 10 : i32, message = "bqk,bkd->bqd"}> : () -> ()
    %cst_20 = arith.constant dense<0.000000e+00> : vector<2x8x8xf32>
    %66 = tpu.matmul %64, %65, %cst_20 {dimension_numbers = #tpu.dot_dimension_numbers<[2], [1], [1], [2], [0, 0, 0, 1, 1, 2], [0], [0]>} : vector<2x8x8xf32>, vector<2x8x8xf32>, vector<2x8x8xf32> -> vector<2x8x8xf32>
    "tpu.trace_stop"() : () -> ()
    %67 = vector.extract_strided_slice %39 {offsets = [0, 0, 8], sizes = [2, 8, 8], strides = [1, 1, 1]} : vector<2x8x32xf32> to vector<2x8x8xf32>
    %68 = vector.extract_strided_slice %41 {offsets = [0, 0, 8], sizes = [2, 8, 8], strides = [1, 1, 1]} : vector<2x8x32xf32> to vector<2x8x8xf32>
    "tpu.trace_start"() <{level = 10 : i32, message = "bqd,bkd->bqk"}> : () -> ()
    %cst_21 = arith.constant dense<0.000000e+00> : vector<2x8x8xf32>
    %69 = tpu.matmul %67, %68, %cst_21 {dimension_numbers = #tpu.dot_dimension_numbers<[2], [2], [1], [1], [0, 0, 0, 1, 1, 1], [0], [0]>} : vector<2x8x8xf32>, vector<2x8x8xf32>, vector<2x8x8xf32> -> vector<2x8x8xf32>
    "tpu.trace_stop"() : () -> ()
    %70 = vector.broadcast %49 : vector<2x1x8xf32> to vector<2x8x8xf32>
    %71 = arith.addf %69, %70 : vector<2x8x8xf32>
    %cst_22 = arith.constant dense<0xFF800000> : vector<2x8xf32>
    %72 = vector.multi_reduction <maximumf>, %71, %cst_22 [2] : vector<2x8x8xf32> to vector<2x8xf32>
    %73 = vector.shape_cast %72 : vector<2x8xf32> to vector<2x8x1xf32>
    %74 = vector.broadcast %73 : vector<2x8x1xf32> to vector<2x8x8xf32>
    %75 = arith.subf %71, %74 : vector<2x8x8xf32>
    %76 = math.exp %75 : vector<2x8x8xf32>
    %cst_23 = arith.constant dense<0.000000e+00> : vector<2x8xf32>
    %77 = vector.multi_reduction <add>, %76, %cst_23 [2] : vector<2x8x8xf32> to vector<2x8xf32>
    %78 = vector.shape_cast %77 : vector<2x8xf32> to vector<2x8x1xf32>
    %79 = tpu.reciprocal %78 {approx = true} : vector<2x8x1xf32> -> vector<2x8x1xf32>
    %80 = vector.broadcast %79 : vector<2x8x1xf32> to vector<2x8x8xf32>
    %81 = arith.mulf %76, %80 : vector<2x8x8xf32>
    %82 = vector.extract_strided_slice %43 {offsets = [0, 0, 8], sizes = [2, 8, 8], strides = [1, 1, 1]} : vector<2x8x32xf32> to vector<2x8x8xf32>
    "tpu.trace_start"() <{level = 10 : i32, message = "bqk,bkd->bqd"}> : () -> ()
    %cst_24 = arith.constant dense<0.000000e+00> : vector<2x8x8xf32>
    %83 = tpu.matmul %81, %82, %cst_24 {dimension_numbers = #tpu.dot_dimension_numbers<[2], [1], [1], [2], [0, 0, 0, 1, 1, 2], [0], [0]>} : vector<2x8x8xf32>, vector<2x8x8xf32>, vector<2x8x8xf32> -> vector<2x8x8xf32>
    "tpu.trace_stop"() : () -> ()
    %84 = vector.extract_strided_slice %39 {offsets = [0, 0, 16], sizes = [2, 8, 8], strides = [1, 1, 1]} : vector<2x8x32xf32> to vector<2x8x8xf32>
    %85 = vector.extract_strided_slice %41 {offsets = [0, 0, 16], sizes = [2, 8, 8], strides = [1, 1, 1]} : vector<2x8x32xf32> to vector<2x8x8xf32>
    "tpu.trace_start"() <{level = 10 : i32, message = "bqd,bkd->bqk"}> : () -> ()
    %cst_25 = arith.constant dense<0.000000e+00> : vector<2x8x8xf32>
    %86 = tpu.matmul %84, %85, %cst_25 {dimension_numbers = #tpu.dot_dimension_numbers<[2], [2], [1], [1], [0, 0, 0, 1, 1, 1], [0], [0]>} : vector<2x8x8xf32>, vector<2x8x8xf32>, vector<2x8x8xf32> -> vector<2x8x8xf32>
    "tpu.trace_stop"() : () -> ()
    %87 = vector.broadcast %49 : vector<2x1x8xf32> to vector<2x8x8xf32>
    %88 = arith.addf %86, %87 : vector<2x8x8xf32>
    %cst_26 = arith.constant dense<0xFF800000> : vector<2x8xf32>
    %89 = vector.multi_reduction <maximumf>, %88, %cst_26 [2] : vector<2x8x8xf32> to vector<2x8xf32>
    %90 = vector.shape_cast %89 : vector<2x8xf32> to vector<2x8x1xf32>
    %91 = vector.broadcast %90 : vector<2x8x1xf32> to vector<2x8x8xf32>
    %92 = arith.subf %88, %91 : vector<2x8x8xf32>
    %93 = math.exp %92 : vector<2x8x8xf32>
    %cst_27 = arith.constant dense<0.000000e+00> : vector<2x8xf32>
    %94 = vector.multi_reduction <add>, %93, %cst_27 [2] : vector<2x8x8xf32> to vector<2x8xf32>
    %95 = vector.shape_cast %94 : vector<2x8xf32> to vector<2x8x1xf32>
    %96 = tpu.reciprocal %95 {approx = true} : vector<2x8x1xf32> -> vector<2x8x1xf32>
    %97 = vector.broadcast %96 : vector<2x8x1xf32> to vector<2x8x8xf32>
    %98 = arith.mulf %93, %97 : vector<2x8x8xf32>
    %99 = vector.extract_strided_slice %43 {offsets = [0, 0, 16], sizes = [2, 8, 8], strides = [1, 1, 1]} : vector<2x8x32xf32> to vector<2x8x8xf32>
    "tpu.trace_start"() <{level = 10 : i32, message = "bqk,bkd->bqd"}> : () -> ()
    %cst_28 = arith.constant dense<0.000000e+00> : vector<2x8x8xf32>
    %100 = tpu.matmul %98, %99, %cst_28 {dimension_numbers = #tpu.dot_dimension_numbers<[2], [1], [1], [2], [0, 0, 0, 1, 1, 2], [0], [0]>} : vector<2x8x8xf32>, vector<2x8x8xf32>, vector<2x8x8xf32> -> vector<2x8x8xf32>
    "tpu.trace_stop"() : () -> ()
    %101 = vector.extract_strided_slice %39 {offsets = [0, 0, 24], sizes = [2, 8, 8], strides = [1, 1, 1]} : vector<2x8x32xf32> to vector<2x8x8xf32>
    %102 = vector.extract_strided_slice %41 {offsets = [0, 0, 24], sizes = [2, 8, 8], strides = [1, 1, 1]} : vector<2x8x32xf32> to vector<2x8x8xf32>
    "tpu.trace_start"() <{level = 10 : i32, message = "bqd,bkd->bqk"}> : () -> ()
    %cst_29 = arith.constant dense<0.000000e+00> : vector<2x8x8xf32>
    %103 = tpu.matmul %101, %102, %cst_29 {dimension_numbers = #tpu.dot_dimension_numbers<[2], [2], [1], [1], [0, 0, 0, 1, 1, 1], [0], [0]>} : vector<2x8x8xf32>, vector<2x8x8xf32>, vector<2x8x8xf32> -> vector<2x8x8xf32>
    "tpu.trace_stop"() : () -> ()
    %104 = vector.broadcast %49 : vector<2x1x8xf32> to vector<2x8x8xf32>
    %105 = arith.addf %103, %104 : vector<2x8x8xf32>
    %cst_30 = arith.constant dense<0xFF800000> : vector<2x8xf32>
    %106 = vector.multi_reduction <maximumf>, %105, %cst_30 [2] : vector<2x8x8xf32> to vector<2x8xf32>
    %107 = vector.shape_cast %106 : vector<2x8xf32> to vector<2x8x1xf32>
    %108 = vector.broadcast %107 : vector<2x8x1xf32> to vector<2x8x8xf32>
    %109 = arith.subf %105, %108 : vector<2x8x8xf32>
    %110 = math.exp %109 : vector<2x8x8xf32>
    %cst_31 = arith.constant dense<0.000000e+00> : vector<2x8xf32>
    %111 = vector.multi_reduction <add>, %110, %cst_31 [2] : vector<2x8x8xf32> to vector<2x8xf32>
    %112 = vector.shape_cast %111 : vector<2x8xf32> to vector<2x8x1xf32>
    %113 = tpu.reciprocal %112 {approx = true} : vector<2x8x1xf32> -> vector<2x8x1xf32>
    %114 = vector.broadcast %113 : vector<2x8x1xf32> to vector<2x8x8xf32>
    %115 = arith.mulf %110, %114 : vector<2x8x8xf32>
    %116 = vector.extract_strided_slice %43 {offsets = [0, 0, 24], sizes = [2, 8, 8], strides = [1, 1, 1]} : vector<2x8x32xf32> to vector<2x8x8xf32>
    "tpu.trace_start"() <{level = 10 : i32, message = "bqk,bkd->bqd"}> : () -> ()
    %cst_32 = arith.constant dense<0.000000e+00> : vector<2x8x8xf32>
    %117 = tpu.matmul %115, %116, %cst_32 {dimension_numbers = #tpu.dot_dimension_numbers<[2], [1], [1], [2], [0, 0, 0, 1, 1, 2], [0], [0]>} : vector<2x8x8xf32>, vector<2x8x8xf32>, vector<2x8x8xf32> -> vector<2x8x8xf32>
    "tpu.trace_stop"() : () -> ()
    %118 = tpu.concatenate %66, %83, %100, %117 in 2 : vector<2x8x8xf32>, vector<2x8x8xf32>, vector<2x8x8xf32>, vector<2x8x8xf32> -> vector<2x8x32xf32>
    %119 = vector.shape_cast %118 : vector<2x8x32xf32> to vector<16x32xf32>
    %c0_33 = arith.constant 0 : index
    %c0_34 = arith.constant 0 : index
    %120 = vector.load %arg4[%c0_33, %c0_34] : memref<32x32xf32, #tpu.memory_space<vmem>>, vector<32x32xf32>
    %cst_35 = arith.constant dense<0.000000e+00> : vector<16x32xf32>
    %121 = tpu.matmul %119, %120, %cst_35 {dimension_numbers = #tpu.dot_dimension_numbers<[1], [0], [0], [1], [0, 0, 1, 1], [], []>} : vector<16x32xf32>, vector<32x32xf32>, vector<16x32xf32> -> vector<16x32xf32>
    %122 = vector.broadcast %4 : vector<1x32xf32> to vector<16x32xf32>
    %123 = arith.addf %121, %122 : vector<16x32xf32>
    %124 = arith.addf %123, %0 : vector<16x32xf32>
    %cst_36 = arith.constant dense<0.000000e+00> : vector<16xf32>
    %125 = vector.multi_reduction <add>, %124, %cst_36 [1] : vector<16x32xf32> to vector<16xf32>
    %126 = vector.shape_cast %125 : vector<16xf32> to vector<16x1xf32>
    %cst_37 = arith.constant 3.200000e+01 : f32
    %127 = vector.broadcast %cst_37 : f32 to vector<16x1xf32>
    %128 = arith.divf %126, %127 : vector<16x1xf32>
    %129 = vector.broadcast %128 : vector<16x1xf32> to vector<16x32xf32>
    %130 = arith.subf %124, %129 : vector<16x32xf32>
    %131 = arith.mulf %130, %130 : vector<16x32xf32>
    %cst_38 = arith.constant dense<0.000000e+00> : vector<16xf32>
    %132 = vector.multi_reduction <add>, %131, %cst_38 [1] : vector<16x32xf32> to vector<16xf32>
    %133 = vector.shape_cast %132 : vector<16xf32> to vector<16x1xf32>
    %cst_39 = arith.constant 3.200000e+01 : f32
    %134 = vector.broadcast %cst_39 : f32 to vector<16x1xf32>
    %135 = arith.divf %133, %134 : vector<16x1xf32>
    %136 = vector.broadcast %128 : vector<16x1xf32> to vector<16x32xf32>
    %137 = arith.subf %124, %136 : vector<16x32xf32>
    %cst_40 = arith.constant 9.99999997E-7 : f32
    %138 = vector.broadcast %cst_40 : f32 to vector<16x1xf32>
    %139 = arith.addf %135, %138 : vector<16x1xf32>
    %140 = math.rsqrt %139 : vector<16x1xf32>
    %141 = vector.broadcast %140 : vector<16x1xf32> to vector<16x32xf32>
    %142 = arith.mulf %137, %141 : vector<16x32xf32>
    %143 = vector.broadcast %5 : vector<1x32xf32> to vector<16x32xf32>
    %144 = arith.mulf %142, %143 : vector<16x32xf32>
    %145 = vector.broadcast %6 : vector<1x32xf32> to vector<16x32xf32>
    %146 = arith.addf %144, %145 : vector<16x32xf32>
    %c0_41 = arith.constant 0 : index
    %c0_42 = arith.constant 0 : index
    %147 = vector.load %arg5[%c0_41, %c0_42] : memref<32x64xf32, #tpu.memory_space<vmem>>, vector<32x64xf32>
    %cst_43 = arith.constant dense<0.000000e+00> : vector<16x64xf32>
    %148 = tpu.matmul %146, %147, %cst_43 {dimension_numbers = #tpu.dot_dimension_numbers<[1], [0], [0], [1], [0, 0, 1, 1], [], []>} : vector<16x32xf32>, vector<32x64xf32>, vector<16x64xf32> -> vector<16x64xf32>
    %149 = vector.broadcast %8 : vector<1x64xf32> to vector<16x64xf32>
    %150 = arith.addf %148, %149 : vector<16x64xf32>
    %cst_44 = arith.constant 5.000000e-01 : f32
    %151 = vector.broadcast %cst_44 : f32 to vector<16x64xf32>
    %152 = arith.mulf %151, %150 : vector<16x64xf32>
    %153 = arith.mulf %150, %150 : vector<16x64xf32>
    %154 = arith.mulf %150, %153 : vector<16x64xf32>
    %cst_45 = arith.constant 4.471500e-02 : f32
    %155 = vector.broadcast %cst_45 : f32 to vector<16x64xf32>
    %156 = arith.mulf %155, %154 : vector<16x64xf32>
    %157 = arith.addf %150, %156 : vector<16x64xf32>
    %cst_46 = arith.constant 0.797884583 : f32
    %158 = vector.broadcast %cst_46 : f32 to vector<16x64xf32>
    %159 = arith.mulf %158, %157 : vector<16x64xf32>
    %160 = math.tanh %159 : vector<16x64xf32>
    %cst_47 = arith.constant 1.000000e+00 : f32
    %161 = vector.broadcast %cst_47 : f32 to vector<16x64xf32>
    %162 = arith.addf %161, %160 : vector<16x64xf32>
    %163 = arith.mulf %152, %162 : vector<16x64xf32>
    %c0_48 = arith.constant 0 : index
    %c0_49 = arith.constant 0 : index
    %164 = vector.load %arg6[%c0_48, %c0_49] : memref<64x32xf32, #tpu.memory_space<vmem>>, vector<64x32xf32>
    %cst_50 = arith.constant dense<0.000000e+00> : vector<16x32xf32>
    %165 = tpu.matmul %163, %164, %cst_50 {dimension_numbers = #tpu.dot_dimension_numbers<[1], [0], [0], [1], [0, 0, 1, 1], [], []>} : vector<16x64xf32>, vector<64x32xf32>, vector<16x32xf32> -> vector<16x32xf32>
    %166 = vector.broadcast %7 : vector<1x32xf32> to vector<16x32xf32>
    %167 = arith.addf %165, %166 : vector<16x32xf32>
    %168 = arith.addf %167, %124 : vector<16x32xf32>
    %c0_51 = arith.constant 0 : index
    %c0_52 = arith.constant 0 : index
    %169 = vector.load %arg8[%c0_51, %c0_52] : memref<16x32xf32, #tpu.memory_space<vmem>>, vector<16x32xf32>
    tpu.vector_store %arg8[%c0_51, %c0_52], %168 {strides = array<i32>} : memref<16x32xf32, #tpu.memory_space<vmem>>, vector<16x32xf32>,
    return
  }
  func.func @transform_0(%arg0: i32) -> (i32, i32) {
    %c0_i32 = arith.constant 0 : i32
    %c0_i32_0 = arith.constant 0 : i32
    return %arg0, %c0_i32 : i32, i32
  }
  func.func @transform_1(%arg0: i32) -> (i32, i32, i32) {
    %c0_i32 = arith.constant 0 : i32
    %c0_i32_0 = arith.constant 0 : i32
    %c0_i32_1 = arith.constant 0 : i32
    return %arg0, %c0_i32, %c0_i32_0 : i32, i32, i32
  }
  func.func @transform_2(%arg0: i32) -> (i32, i32) {
    %c0_i32 = arith.constant 0 : i32
    %c0_i32_0 = arith.constant 0 : i32
    %c0_i32_1 = arith.constant 0 : i32
    return %c0_i32, %c0_i32_0 : i32, i32
  }
  func.func @transform_3(%arg0: i32) -> (i32, i32) {
    %c0_i32 = arith.constant 0 : i32
    %c0_i32_0 = arith.constant 0 : i32
    %c0_i32_1 = arith.constant 0 : i32
    return %c0_i32, %c0_i32_0 : i32, i32
  }
  func.func @transform_4(%arg0: i32) -> (i32, i32) {
    %c0_i32 = arith.constant 0 : i32
    %c0_i32_0 = arith.constant 0 : i32
    %c0_i32_1 = arith.constant 0 : i32
    return %c0_i32, %c0_i32_0 : i32, i32
  }
  func.func @transform_5(%arg0: i32) -> (i32, i32) {
    %c0_i32 = arith.constant 0 : i32
    %c0_i32_0 = arith.constant 0 : i32
    %c0_i32_1 = arith.constant 0 : i32
    return %c0_i32, %c0_i32_0 : i32, i32
  }
  func.func @transform_6(%arg0: i32) -> (i32, i32) {
    %c0_i32 = arith.constant 0 : i32
    %c0_i32_0 = arith.constant 0 : i32
    %c0_i32_1 = arith.constant 0 : i32
    return %c0_i32, %c0_i32_0 : i32, i32
  }
  func.func @transform_7(%arg0: i32) -> (i32, i32) {
    %c0_i32 = arith.constant 0 : i32
    %c0_i32_0 = arith.constant 0 : i32
    return %arg0, %c0_i32 : i32, i32
  }
}

</mosaic_0001>

<bundles_post_ra>
// kernel: tpu_custom_call.1
= control target key start
LH: loop header
LB: loop body
LE: loop exit
PB: predicated region body
PF: predicated region fallthrough
CT: control target
= control target key end

     0   :  { %12 = vsyncpa [#allocation3], 0  ;;  %s2638_s0 = inlined_call_operand.hbm [shape: f32[16,32], index: 0, kind: input, shape index: {}]   ;;  %s2639_s1 = inlined_call_operand.vmem [shape: f32[2,1,8], index: 1, kind: input, shape index: {}]   ;;  %s2640_s2 = inlined_call_operand.vmem [shape: f32[32,96], index: 2, kind: input, shape index: {}]   ;;  %s2641_s3 = inlined_call_operand.vmem [shape: f32[32,32], index: 3, kind: input, shape index: {}]   ;;  %s2642_s4 = inlined_call_operand.vmem [shape: f32[32,64], index: 4, kind: input, shape index: {}]   ;;  %s2643_s5 = inlined_call_operand.vmem [shape: f32[64,32], index: 5, kind: input, shape index: {}]   ;;  %s2644_s6 = inlined_call_operand.vmem [shape: f32[8,96], index: 6, kind: input, shape index: {}]   ;;  %s2645_s7 = inlined_call_operand.hbm [shape: f32[16,32], index: 7, kind: output, shape index: {}]  }
   0x1   :  { %13 = vsyncpa [#allocation4], 0  ;;  %s2272_s24 = smov [#allocation2]   ;;  %s2224_s28 = scalar_lea.hbm %s2638_s0, 256 }
   0x2   :  { %s19_s25 = sshll.u32 %s2272_s24, 4  ;;  %p2225_p0 = scmp.ne.s32.totalorder %s2638_s0, %s2224_s28  ;;  %s20_s25 = int_to_ptr.vmem [resolvable:$true] %s19_s25 }
   0x3   :  { %p2228_p1 = scmp.lt.u32.totalorder %s2224_s28, %s2638_s0 }
   0x5   :  { %p2230_p2 = pnand %p2228_p1, %p2225_p0 }
   0x7   :  { %2233 = shalt.err (!%p2230_p2)
}
   0x8   :  { %s2234_s10 = scalar_lea.vmem %s20_s25, 256  ;;  %p2239_p4 = scmp.lt.s32.totalorder %s20_s25, %s20_s25 }
   0x9   :  { %p2235_p3 = scmp.ne.s32.totalorder %s20_s25, %s2234_s10  ;;  %p2240_p5 = scmp.lt.s32.totalorder %s2234_s10, %s2234_s10 }
   0xb   :  { %p2241_p6 = por %p2240_p5, %p2239_p4 }
   0xd   :  { %p2242_p7 = pnand %p2241_p6, %p2235_p3 }
   0xf   :  { %2245 = shalt.err (!%p2242_p7)
}
  0x10   :  { %s2273_s11 = smov 128   ;;  %s2274_s12 = smov 8  }
  0x11   :  { %25 = dma.hbm_to_vmem [thread:$0]  %s2638_s0, 256, %s20_s25, [#allocation3], %s2273_s11, %s2273_s11, %s2274_s12  }
  0x12   :  { %2268 = dma.done.wait [#allocation3], 256  }
  0x13   :  { %2269 = vsyncadd [#allocation3], 4294967040  ;;  %vm44_vm0 = vcmask 261120   ;;  %v2346_v0 = vld [vmem:[#allocation2] sm:$0xff]  ;;  %v2348_v1 = vld [vmem:[#allocation2 + $0x8] sm:$0xff]  ;;  %v72_v22 = vlaneseq  ;;  %v2275_v41 = vmov 0.0  }
  0x14   :  { %v45_v2 = vsel %vm44_vm0, %v2346_v0, 0.0  ;;  %v48_v3 = vsel %vm44_vm0, %v2348_v1, 0.0  ;;  %v84_v14 = vld [vmem:[%s2640_s2] sm:$0xff]  ;;  %v85_v15 = vld [vmem:[%s2640_s2 + $0x8] sm:$0xff]  ;;  %v86_v16 = vld [vmem:[%s2640_s2 + $0x10] sm:$0xff]  ;;  %2010 = vmatprep.subr.mxu0 %v2275_v41  ;;  %vm2276_vm1 = vmmov 0  }
  0x15   :  { %46 = vadd.xlane.f32.xlu0 %v45_v2  ;;  %v2121_v17 = vpack.c.bf16 %v85_v15, %v84_v14  ;;  %v87_v18 = vld [vmem:[%s2640_s2 + $0x18] sm:$0xff]  ;;  %v2370_v26 = vshrl.u32 %v72_v22, 7  ;;  %v2376_v29 = vld [vmem:[%s2644_s6] sm:$0xff]  ;;  %2012 = vmatprep.mubr.msk.f32.mxu0 %vm2276_vm1, %v2275_v41  ;;  %s2277_s6 = smov 96   ;;  %vm196_vm2 = vcmask 64512   ;;  %s2279_s27 = smov 88  }
  0x16   :  { %v2125_v19 = vpack.c.bf16 %v87_v18, %v86_v16  ;;  %v175_v52 = vld [vmem:[%s2639_s1] sm:$0x1]  ;;  %v176_v53 = vld [vmem:[%s2639_s1 + $0x1] sm:$0x1]  ;;  %s2278_s1 = smov 64   ;;  %s2280_s28 = smov 120  }
  0x17   :  { %2122 = vmatprep.subr.bf16.mxu1 %v2121_v17  ;;  %v74_v28 = vsub.s32 0, %v2370_v26  ;;  %v80_v30 = vsub.s32 1, %v2370_v26  ;;  %v90_v42 = vsub.s32 7, %v2370_v26  ;;  %vm177_vm3 = vcmp.gt.f32.partialorder %v175_v52, 0.5  ;;  %s2281_s29 = smov 56   ;;  %s2282_s30 = smov 80  }
  0x18   :  { %2124 = vmatpush3.bf16.msra.mxu1 %v2121_v17  ;;  %v179_v54 = vsel %vm177_vm3, -1e+18, %v2275_v41  ;;  %vm178_vm4 = vcmp.gt.f32.partialorder %v176_v53, 0.5  ;;  %s2283_s8 = smov 112   ;;  %s2284_s9 = smov 48   ;;  %vm1543_vm5 = vcmask 195584  }
  0x19   :  { %49 = vadd.xlane.f32.xlu0 %v48_v3  ;;  %2126 = vmatprep.subr.bf16.mxu1 %v2125_v19  ;;  %v75_v31 = vrot.slane %v2376_v29, %v74_v28  ;;  %v81_v34 = vrot.slane %v2376_v29, %v80_v30  ;;  %v91_v43 = vrot.slane %v2376_v29, %v90_v42  ;;  %v180_v56 = vsel %vm178_vm4, -1e+18, %v2275_v41  ;;  %s2285_s10 = smov 72   ;;  %s2286_s13 = smov 104  }
  0x1a   :  { %v2422_v55 = vrot.slane %v179_v54, %v74_v28  ;;  %v2426_v60 = vrot.slane %v180_v56, %v74_v28  ;;  %s2287_s14 = smov 40   ;;  %s2288_s0 = smov 16   ;;  %vm1540_vm6 = vcmask 130048   ;;  %vm1794_vm7 = vcmask 523264  }
  0x1b   :  { %s2289_s2 = smov 24  }
  0x1c   :  { %2128 = vmatpush3.bf16.msra.mxu1 %v2125_v19 }
  0x1d   :  { %2000 = vmatprep.subr.mxu1 %v2275_v41 }
  0xa2   :  { %v47_v4 = vpop.xlane.xlu0 %46 }
  0xa3   :  { %v52_v5 = vmul.f32 0.03125, %v47_v4 }
  0xa5   :  { %v54_v6 = vsub.f32 %v2346_v0, %v52_v5 }
  0xa6   :  { %v50_v7 = vpop.xlane.xlu0 %49 }
  0xa7   :  { %v53_v8 = vmul.f32 0.03125, %v50_v7  ;;  %v56_v9 = vmul.f32 %v54_v6, %v54_v6 }
  0xa9   :  { %v55_v10 = vsub.f32 %v2348_v1, %v53_v8  ;;  %v58_v11 = vsel %vm44_vm0, %v56_v9, 0.0 }
  0xaa   :  { %59 = vadd.xlane.f32.xlu1 %v58_v11 }
  0xab   :  { %v57_v12 = vmul.f32 %v55_v10, %v55_v10 }
  0xad   :  { %v61_v13 = vsel %vm44_vm0, %v57_v12, 0.0 }
  0xae   :  { %62 = vadd.xlane.f32.xlu1 %v61_v13 }
 0x137   :  { %v60_v20 = vpop.xlane.xlu1 %59 }
 0x138   :  { %v64_v21 = vmul.f32 0.03125, %v60_v20 }
 0x13a   :  { %v66_v23 = vadd.f32 1e-06, %v64_v21 }
 0x13b   :  { %v63_v24 = vpop.xlane.xlu1 %62 }
 0x13c   :  { %2180 = vrsqrt.f32 %v66_v23  ;;  %v65_v25 = vmul.f32 0.03125, %v63_v24 }
 0x13e   :  { %v67_v27 = vadd.f32 1e-06, %v65_v25 }
 0x140   :  { %2182 = vrsqrt.f32 %v67_v27 }
 0x146   :  { %v2181_v32 = vpop.eup %2180 }
 0x147   :  { %v70_v33 = vmul.f32 %v2181_v32, %v54_v6 }
 0x149   :  { %v76_v35 = vmul.f32 %v75_v31, %v70_v33 }
 0x14a   :  { %v2183_v36 = vpop.eup %2182 }
 0x14b   :  { %v71_v37 = vmul.f32 %v2183_v36, %v55_v10  ;;  %v82_v38 = vadd.f32 %v81_v34, %v76_v35 }
 0x14d   :  { %v77_v39 = vmul.f32 %v75_v31, %v71_v37  ;;  %1997 = vmatprep.mubr.msk.f32.mxu1 %vm44_vm0, %v82_v38 }
 0x14f   :  { %v83_v40 = vadd.f32 %v81_v34, %v77_v39 }
 0x151   :  { %1998 = vmatmul.mubr.msk.f32.vlgmr.msra.gmra.mrb[0].mxu1 %vm44_vm0, %v83_v40 }
 0x152   :  { %2002 = vmatprep.mubr.msk.f32.mxu1 %vm2276_vm1, %v2275_v41 }
 0x224   :  { %v1999_v44 = vpop.f32.mrb[0].mxu1 }
 0x225   :  { %v2391_v45 = vadd.f32 %v1999_v44, %v91_v43  ;;  %v164_v46 = vpop.f32.mrb[1].mxu1 }
 0x226   :  { %v2393_v47 = vadd.f32 %v164_v46, %v91_v43 }
 0x227   :  { %273 = vrot.lane.b32.xlu1 %v2391_v45, %s2277_s6  ;;  %v2408_v51 = vmul.f32 0.35355338, %v2391_v45 }
 0x228   :  { %194 = vrot.lane.b32.xlu0 %v2393_v47, %s2277_s6  ;;  %v2399_v49 = vmul.f32 0.35355338, %v2393_v47 }
 0x299   :  { %v274_v50 = vpop.permute.xlu1 %273 }
 0x29a   :  { %v195_v48 = vpop.permute.xlu0 %194 }
 0x29b   :  { %2001 = vmatpush3.xpose.msk.msra.mxu1 %vm196_vm2, %v195_v48 }
 0x29c   :  { %2005 = vmatprep.subr.mxu1 %v2275_v41 }
 0x29e   :  { %2003 = vmatmul.mubr.msk.f32.vlgmr.msra.gmra.mrb[2].mxu1 %vm196_vm2, %v2399_v49 }
 0x29f   :  { %2006 = vmatpush3.xpose.msk.msra.mxu1 %vm196_vm2, %v274_v50  ;;  %2007 = vmatprep.mubr.msk.f32.mxu1 %vm2276_vm1, %v2275_v41 }
 0x2a0   :  { %2015 = vmatprep.subr.mxu1 %v2275_v41 }
 0x2a2   :  { %2008 = vmatmul.mubr.msk.f32.vlgmr.msra.gmra.mrb[4].mxu1 %vm196_vm2, %v2408_v51 }
 0x2a3   :  { %2017 = vmatprep.mubr.msk.f32.mxu1 %vm2276_vm1, %v2275_v41 }
 0x371   :  { %v268_v57 = vpop.f32.mrb[2].mxu1 }
 0x372   :  { %v269_v58 = vadd.f32 %v268_v57, %v2422_v55  ;;  %v2004_v59 = vpop.f32.mrb[3].mxu1 }
 0x374   :  { %v350_v61 = vsel %vm196_vm2, %v269_v58, -inf }
 0x375   :  { %351 = vmax.xlane.f32.xlu1 %v350_v61  ;;  %v346_v62 = vpop.f32.mrb[4].mxu1 }
 0x376   :  { %v347_v63 = vadd.f32 %v346_v62, %v2426_v60  ;;  %v2009_v2 = vpop.f32.mrb[5].mxu1 }
 0x378   :  { %v353_v3 = vsel %vm196_vm2, %v347_v63, -inf }
 0x379   :  { %354 = vmax.xlane.f32.xlu0 %v353_v3 }
 0x386   :  { %448 = vrot.lane.b32.xlu1 %v2391_v45, %s2278_s1 }
 0x38a   :  { %526 = vrot.lane.b32.xlu1 %v2393_v47, %s2279_s27 }
 0x38e   :  { %604 = vrot.lane.b32.xlu1 %v2391_v45, %s2279_s27 }
 0x38f   :  { %372 = vrot.lane.b32.xlu0 %v2393_v47, %s2278_s1 }
 0x402   :  { %v352_v4 = vpop.xlane.xlu1 %351 }
 0x403   :  { %v356_v5 = vsub.f32 %v269_v58, %v352_v4 }
 0x405   :  { %v358_v6 = vmul.f32 1.442695, %v356_v5 }
 0x406   :  { %v449_v7 = vpop.permute.xlu1 %448  ;;  %v355_v8 = vpop.xlane.xlu0 %354 }
 0x407   :  { %2184 = vpow2.f32 %v358_v6  ;;  %v357_v9 = vsub.f32 %v347_v63, %v355_v8  ;;  %2016 = vmatpush3.msra.mxu1 %v449_v7 }
 0x408   :  { %2025 = vmatprep.subr.mxu1 %v2275_v41 }
 0x409   :  { %v360_v10 = vmul.f32 1.442695, %v357_v9 }
 0x40a   :  { %v373_v11 = vpop.permute.xlu0 %372  ;;  %v527_v16 = vpop.permute.xlu1 %526 }
 0x40b   :  { %2186 = vpow2.f32 %v360_v10  ;;  %2011 = vmatpush3.msra.mxu0 %v373_v11 }
 0x40c   :  { %2020 = vmatprep.subr.mxu0 %v2275_v41 }
 0x40e   :  { %v605_v17 = vpop.permute.xlu1 %604 }
 0x411   :  { %v2185_v12 = vpop.eup %2184 }
 0x412   :  { %v362_v13 = vsel %vm196_vm2, %v2185_v12, 0.0 }
 0x413   :  { %363 = vadd.xlane.f32.xlu0 %v362_v13 }
 0x415   :  { %v2187_v14 = vpop.eup %2186 }
 0x416   :  { %v365_v15 = vsel %vm196_vm2, %v2187_v14, 0.0 }
 0x417   :  { %366 = vadd.xlane.f32.xlu1 %v365_v15 }
 0x428   :  { %602 = vrot.lane.b32.xlu1 %v2408_v51, %s2280_s28 }
 0x429   :  { %524 = vrot.lane.b32.xlu0 %v2399_v49, %s2280_s28 }
 0x4a0   :  { %v364_v18 = vpop.xlane.xlu0 %363 }
 0x4a1   :  { %2188 = vrcp.f32 %v364_v18 }
 0x4a4   :  { %v367_v19 = vpop.xlane.xlu1 %366  ;;  %v525_v24 = vpop.permute.xlu0 %524 }
 0x4a5   :  { %2190 = vrcp.f32 %v367_v19 }
 0x4a8   :  { %v603_v25 = vpop.permute.xlu1 %602 }
 0x4ab   :  { %v2189_v20 = vpop.eup %2188 }
 0x4ac   :  { %v370_v21 = vmul.f32 %v2189_v20, %v2185_v12 }
 0x4ae   :  { %2013 = vmatmul.mubr.msk.f32.vlgmr.msra.gmra.mrb[0].mxu0 %vm196_vm2, %v370_v21 }
 0x4af   :  { %v2191_v22 = vpop.eup %2190  ;;  %2021 = vmatpush3.xpose.msk.msra.mxu0 %vm196_vm2, %v527_v16  ;;  %2022 = vmatprep.mubr.msk.f32.mxu0 %vm2276_vm1, %v2275_v41 }
 0x4b0   :  { %v371_v23 = vmul.f32 %v2191_v22, %v2187_v14  ;;  %2030 = vmatprep.subr.mxu0 %v2275_v41 }
 0x4b2   :  { %2018 = vmatmul.mubr.msk.f32.vlgmr.msra.gmra.mrb[6].mxu1 %vm196_vm2, %v371_v23  ;;  %2023 = vmatmul.mubr.msk.f32.vlgmr.msra.gmra.mrb[2].mxu0 %vm196_vm2, %v525_v24 }
 0x4b3   :  { %2026 = vmatpush3.xpose.msk.msra.mxu1 %vm196_vm2, %v605_v17  ;;  %2027 = vmatprep.mubr.msk.f32.mxu1 %vm2276_vm1, %v2275_v41 }
 0x4b4   :  { %2035 = vmatprep.subr.mxu1 %v2275_v41  ;;  %2032 = vmatprep.mubr.msk.f32.mxu0 %vm2276_vm1, %v2275_v41 }
 0x4b6   :  { %2028 = vmatmul.mubr.msk.f32.vlgmr.msra.gmra.mrb[8].mxu1 %vm196_vm2, %v603_v25 }
 0x4b7   :  { %2037 = vmatprep.mubr.msk.f32.mxu1 %vm2276_vm1, %v2275_v41 }
 0x581   :  { %v2457_v27 = vpop.f32.mrb[0].mxu0 }
 0x582   :  { %v2014_v28 = vpop.f32.mrb[1].mxu0 }
 0x585   :  { %v2459_v30 = vpop.f32.mrb[6].mxu1  ;;  %v598_v31 = vpop.f32.mrb[2].mxu0 }
 0x586   :  { %v599_v32 = vadd.f32 %v598_v31, %v2422_v55  ;;  %v2019_v33 = vpop.f32.mrb[7].mxu1  ;;  %v2024_v34 = vpop.f32.mrb[3].mxu0 }
 0x588   :  { %v680_v35 = vsel %vm196_vm2, %v599_v32, -inf }
 0x589   :  { %681 = vmax.xlane.f32.xlu0 %v680_v35  ;;  %v676_v36 = vpop.f32.mrb[8].mxu1 }
 0x58a   :  { %v677_v37 = vadd.f32 %v676_v36, %v2426_v60  ;;  %v2029_v38 = vpop.f32.mrb[9].mxu1 }
 0x58c   :  { %v683_v39 = vsel %vm196_vm2, %v677_v37, -inf }
 0x58d   :  { %684 = vmax.xlane.f32.xlu1 %v683_v39 }
 0x59e   :  { %778 = vrot.lane.b32.xlu1 %v2391_v45, %s2281_s29 }
 0x59f   :  { %702 = vrot.lane.b32.xlu0 %v2393_v47, %s2281_s29 }
 0x5a2   :  { %856 = vrot.lane.b32.xlu1 %v2393_v47, %s2282_s30 }
 0x5a6   :  { %934 = vrot.lane.b32.xlu1 %v2391_v45, %s2282_s30 }
 0x5aa   :  { %932 = vrot.lane.b32.xlu1 %v2408_v51, %s2283_s8 }
 0x616   :  { %v682_v40 = vpop.xlane.xlu0 %681 }
 0x617   :  { %v686_v42 = vsub.f32 %v599_v32, %v682_v40 }
 0x619   :  { %v688_v43 = vmul.f32 1.442695, %v686_v42 }
 0x61a   :  { %v703_v44 = vpop.permute.xlu0 %702  ;;  %v685_v46 = vpop.xlane.xlu1 %684 }
 0x61b   :  { %2192 = vpow2.f32 %v688_v43  ;;  %v687_v48 = vsub.f32 %v677_v37, %v685_v46  ;;  %2031 = vmatpush3.msra.mxu0 %v703_v44 }
 0x61c   :  { %2040 = vmatprep.subr.mxu0 %v2275_v41 }
 0x61d   :  { %v690_v50 = vmul.f32 1.442695, %v687_v48 }
 0x61e   :  { %v779_v52 = vpop.permute.xlu1 %778 }
 0x61f   :  { %2194 = vpow2.f32 %v690_v50  ;;  %2036 = vmatpush3.msra.mxu1 %v779_v52 }
 0x620   :  { %2045 = vmatprep.subr.mxu1 %v2275_v41 }
 0x622   :  { %v857_v61 = vpop.permute.xlu1 %856 }
 0x625   :  { %v2193_v53 = vpop.eup %2192 }
 0x626   :  { %v692_v54 = vsel %vm196_vm2, %v2193_v53, 0.0  ;;  %v935_v3 = vpop.permute.xlu1 %934 }
 0x627   :  { %693 = vadd.xlane.f32.xlu0 %v692_v54 }
 0x629   :  { %v2195_v56 = vpop.eup %2194 }
 0x62a   :  { %v695_v57 = vsel %vm196_vm2, %v2195_v56, 0.0  ;;  %v933_v6 = vpop.permute.xlu1 %932 }
 0x62b   :  { %696 = vadd.xlane.f32.xlu0 %v695_v57 }
 0x641   :  { %854 = vrot.lane.b32.xlu0 %v2399_v49, %s2283_s8 }
 0x6b4   :  { %v694_v58 = vpop.xlane.xlu0 %693 }
 0x6b5   :  { %2196 = vrcp.f32 %v694_v58 }
 0x6b8   :  { %v697_v59 = vpop.xlane.xlu0 %696 }
 0x6b9   :  { %2198 = vrcp.f32 %v697_v59 }
 0x6bc   :  { %v855_v5 = vpop.permute.xlu0 %854 }
 0x6bf   :  { %v2197_v62 = vpop.eup %2196 }
 0x6c0   :  { %v700_v63 = vmul.f32 %v2197_v62, %v2193_v53 }
 0x6c2   :  { %2033 = vmatmul.mubr.msk.f32.vlgmr.msra.gmra.mrb[4].mxu0 %vm196_vm2, %v700_v63 }
 0x6c3   :  { %v2199_v2 = vpop.eup %2198  ;;  %2041 = vmatpush3.xpose.msk.msra.mxu0 %vm196_vm2, %v857_v61  ;;  %2042 = vmatprep.mubr.msk.f32.mxu0 %vm2276_vm1, %v2275_v41 }
 0x6c4   :  { %v701_v4 = vmul.f32 %v2199_v2, %v2195_v56  ;;  %2050 = vmatprep.subr.mxu0 %v2275_v41 }
 0x6c6   :  { %2038 = vmatmul.mubr.msk.f32.vlgmr.msra.gmra.mrb[10].mxu1 %vm196_vm2, %v701_v4  ;;  %2043 = vmatmul.mubr.msk.f32.vlgmr.msra.gmra.mrb[6].mxu0 %vm196_vm2, %v855_v5 }
 0x6c7   :  { %2046 = vmatpush3.xpose.msk.msra.mxu1 %vm196_vm2, %v935_v3  ;;  %2047 = vmatprep.mubr.msk.f32.mxu1 %vm2276_vm1, %v2275_v41 }
 0x6c8   :  { %2055 = vmatprep.subr.mxu1 %v2275_v41  ;;  %2052 = vmatprep.mubr.msk.f32.mxu0 %vm2276_vm1, %v2275_v41 }
 0x6ca   :  { %2048 = vmatmul.mubr.msk.f32.vlgmr.msra.gmra.mrb[12].mxu1 %vm196_vm2, %v933_v6 }
 0x6cb   :  { %2057 = vmatprep.mubr.msk.f32.mxu1 %vm2276_vm1, %v2275_v41 }
 0x795   :  { %v2491_v7 = vpop.f32.mrb[4].mxu0 }
 0x796   :  { %v2034_v8 = vpop.f32.mrb[5].mxu0 }
 0x799   :  { %v2493_v9 = vpop.f32.mrb[10].mxu1  ;;  %v928_v10 = vpop.f32.mrb[6].mxu0 }
 0x79a   :  { %v929_v11 = vadd.f32 %v928_v10, %v2422_v55  ;;  %v2039_v12 = vpop.f32.mrb[11].mxu1  ;;  %v2044_v13 = vpop.f32.mrb[7].mxu0 }
 0x79c   :  { %v1010_v14 = vsel %vm196_vm2, %v929_v11, -inf }
 0x79d   :  { %1011 = vmax.xlane.f32.xlu0 %v1010_v14  ;;  %v1006_v15 = vpop.f32.mrb[12].mxu1  ;;  %v1546_v14 = vld [vmem:[%s2641_s3] sm:$0xff] }
 0x79e   :  { %v1007_v16 = vadd.f32 %v1006_v15, %v2426_v60  ;;  %v2049_v17 = vpop.f32.mrb[13].mxu1 }
 0x79f   :  { %v1549_v17 = vld [vmem:[%s2641_s3 + $0x18] sm:$0xff] }
 0x7a0   :  { %v1013_v18 = vsel %vm196_vm2, %v1007_v16, -inf }
 0x7a1   :  { %1014 = vmax.xlane.f32.xlu1 %v1013_v18 }
 0x7b2   :  { %1108 = vrot.lane.b32.xlu1 %v2391_v45, %s2284_s9 }
 0x7b3   :  { %1032 = vrot.lane.b32.xlu0 %v2393_v47, %s2284_s9 }
 0x7b6   :  { %1186 = vrot.lane.b32.xlu1 %v2393_v47, %s2285_s10 }
 0x7ba   :  { %1264 = vrot.lane.b32.xlu1 %v2391_v45, %s2285_s10 }
 0x7be   :  { %1262 = vrot.lane.b32.xlu1 %v2408_v51, %s2286_s13 }
 0x82a   :  { %v1012_v19 = vpop.xlane.xlu0 %1011 }
 0x82b   :  { %v1016_v20 = vsub.f32 %v929_v11, %v1012_v19 }
 0x82d   :  { %v1018_v21 = vmul.f32 1.442695, %v1016_v20 }
 0x82e   :  { %v1033_v22 = vpop.permute.xlu0 %1032  ;;  %v1015_v23 = vpop.xlane.xlu1 %1014 }
 0x82f   :  { %2200 = vpow2.f32 %v1018_v21  ;;  %v1017_v24 = vsub.f32 %v1007_v16, %v1015_v23  ;;  %2051 = vmatpush3.msra.mxu0 %v1033_v22  ;;  %v1548_v16 = vld [vmem:[%s2641_s3 + $0x10] sm:$0xff] }
 0x830   :  { %2060 = vmatprep.subr.mxu0 %v2275_v41  ;;  %v2133_v18 = vpack.c.bf16 %v1549_v17, %v1548_v16  ;;  %v1782_v17 = vld [vmem:[%s2643_s5] sm:$0xff] }
 0x831   :  { %v1020_v25 = vmul.f32 1.442695, %v1017_v24 }
 0x832   :  { %v1109_v28 = vpop.permute.xlu1 %1108 }
 0x833   :  { %2202 = vpow2.f32 %v1020_v25  ;;  %2056 = vmatpush3.msra.mxu1 %v1109_v28 }
 0x834   :  { %2065 = vmatprep.subr.mxu1 %v2275_v41 }
 0x836   :  { %v1187_v36 = vpop.permute.xlu1 %1186 }
 0x839   :  { %v2201_v31 = vpop.eup %2200 }
 0x83a   :  { %v1022_v32 = vsel %vm196_vm2, %v2201_v31, 0.0  ;;  %v1265_v40 = vpop.permute.xlu1 %1264 }
 0x83b   :  { %1023 = vadd.xlane.f32.xlu0 %v1022_v32 }
 0x83d   :  { %v2203_v51 = vpop.eup %2202 }
 0x83e   :  { %v1025_v33 = vsel %vm196_vm2, %v2203_v51, 0.0  ;;  %v1263_v43 = vpop.permute.xlu1 %1262 }
 0x83f   :  { %1026 = vadd.xlane.f32.xlu0 %v1025_v33 }
 0x855   :  { %1184 = vrot.lane.b32.xlu0 %v2399_v49, %s2286_s13 }
 0x8c8   :  { %v1024_v34 = vpop.xlane.xlu0 %1023 }
 0x8c9   :  { %2204 = vrcp.f32 %v1024_v34 }
 0x8cc   :  { %v1027_v35 = vpop.xlane.xlu0 %1026 }
 0x8cd   :  { %2206 = vrcp.f32 %v1027_v35 }
 0x8d0   :  { %v1185_v49 = vpop.permute.xlu0 %1184 }
 0x8d3   :  { %v2205_v37 = vpop.eup %2204 }
 0x8d4   :  { %v1030_v38 = vmul.f32 %v2205_v37, %v2201_v31 }
 0x8d6   :  { %2053 = vmatmul.mubr.msk.f32.vlgmr.msra.gmra.mrb[8].mxu0 %vm196_vm2, %v1030_v38  ;;  %v1552_v38 = vsub.s32 2, %v2370_v26 }
 0x8d7   :  { %v2207_v39 = vpop.eup %2206  ;;  %2061 = vmatpush3.xpose.msk.msra.mxu0 %vm196_vm2, %v1187_v36  ;;  %2062 = vmatprep.mubr.msk.f32.mxu0 %vm2276_vm1, %v2275_v41 }
 0x8d8   :  { %v1031_v42 = vmul.f32 %v2207_v39, %v2203_v51  ;;  %2070 = vmatprep.subr.mxu0 %v2275_v41  ;;  %v1553_v39 = vrot.slane %v2376_v29, %v1552_v38 }
 0x8da   :  { %2058 = vmatmul.mubr.msk.f32.vlgmr.msra.gmra.mrb[14].mxu1 %vm196_vm2, %v1031_v42  ;;  %2063 = vmatmul.mubr.msk.f32.vlgmr.msra.gmra.mrb[10].mxu0 %vm196_vm2, %v1185_v49 }
 0x8db   :  { %2066 = vmatpush3.xpose.msk.msra.mxu1 %vm196_vm2, %v1265_v40  ;;  %2067 = vmatprep.mubr.msk.f32.mxu1 %vm2276_vm1, %v2275_v41 }
 0x8dc   :  { %2075 = vmatprep.subr.mxu1 %v2275_v41  ;;  %2072 = vmatprep.mubr.msk.f32.mxu0 %vm2276_vm1, %v2275_v41 }
 0x8de   :  { %2068 = vmatmul.mubr.msk.f32.vlgmr.msra.gmra.mrb[16].mxu1 %vm196_vm2, %v1263_v43 }
 0x8df   :  { %2077 = vmatprep.mubr.msk.f32.mxu1 %vm2276_vm1, %v2275_v41 }
 0x9a9   :  { %v1104_v44 = vpop.f32.mrb[8].mxu0 }
 0x9aa   :  { %v2054_v46 = vpop.f32.mrb[9].mxu0 }
 0x9ad   :  { %v1180_v48 = vpop.f32.mrb[14].mxu1  ;;  %v1258_v50 = vpop.f32.mrb[10].mxu0 }
 0x9ae   :  { %v1259_v52 = vadd.f32 %v1258_v50, %v2422_v55  ;;  %v2059_v53 = vpop.f32.mrb[15].mxu1  ;;  %v2064_v54 = vpop.f32.mrb[11].mxu0 }
 0x9b0   :  { %v1340_v56 = vsel %vm196_vm2, %v1259_v52, -inf }
 0x9b1   :  { %1341 = vmax.xlane.f32.xlu0 %v1340_v56  ;;  %v1336_v57 = vpop.f32.mrb[16].mxu1 }
 0x9b2   :  { %v1337_v58 = vadd.f32 %v1336_v57, %v2426_v60  ;;  %v2069_v59 = vpop.f32.mrb[17].mxu1 }
 0x9b3   :  { %v1675_v59 = vld [vmem:[%s2642_s4] sm:$0xff] }
 0x9b4   :  { %v1343_v61 = vsel %vm196_vm2, %v1337_v58, -inf }
 0x9b5   :  { %1344 = vmax.xlane.f32.xlu1 %v1343_v61  ;;  %v1676_v61 = vld [vmem:[%s2642_s4 + $0x8] sm:$0xff] }
 0x9c6   :  { %1438 = vrot.lane.b32.xlu1 %v2391_v45, %s2287_s14 }
 0x9ca   :  { %1516 = vrot.lane.b32.xlu1 %v2491_v7, %s2274_s12 }
 0x9ce   :  { %1518 = vrot.lane.b32.xlu1 %v2493_v9, %s2274_s12 }
 0x9d2   :  { %1526 = vrot.lane.b32.xlu1 %v1180_v48, %s2288_s0 }
 0xa3e   :  { %v1342_v41 = vpop.xlane.xlu0 %1341 }
 0xa3f   :  { %v1346_v55 = vsub.f32 %v1259_v52, %v1342_v41  ;;  %v2137_v41 = vpack.c.bf16 %v1676_v61, %v1675_v59  ;;  %v1792_v59 = vsub.s32 5, %v2370_v26 }
 0xa41   :  { %v1348_v62 = vmul.f32 1.442695, %v1346_v55  ;;  %v1677_v55 = vld [vmem:[%s2642_s4 + $0x10] sm:$0xff]  ;;  %v1793_v61 = vrot.slane %v2376_v29, %v1792_v59 }
 0xa42   :  { %v1345_v63 = vpop.xlane.xlu1 %1344 }
 0xa43   :  { %2208 = vpow2.f32 %v1348_v62  ;;  %v1347_v60 = vsub.f32 %v1337_v58, %v1345_v63  ;;  %v1678_v62 = vld [vmem:[%s2642_s4 + $0x18] sm:$0xff] }
 0xa44   :  { %v2141_v63 = vpack.c.bf16 %v1678_v62, %v1677_v55 }
 0xa45   :  { %v1350_v2 = vmul.f32 1.442695, %v1347_v60 }
 0xa46   :  { %v1439_v3 = vpop.permute.xlu1 %1438 }
 0xa47   :  { %2210 = vpow2.f32 %v1350_v2  ;;  %2076 = vmatpush3.msra.mxu1 %v1439_v3 }
 0xa48   :  { %2138 = vmatprep.subr.bf16.mxu1 %v2137_v41 }
 0xa4a   :  { %v1517_v23 = vpop.permute.xlu1 %1516 }
 0xa4b   :  { %v1538_v28 = vsel %vm196_vm2, %v2457_v27, %v1517_v23  ;;  %v1786_v23 = vld [vmem:[%s2643_s5 + $0x20] sm:$0xff] }
 0xa4d   :  { %v2209_v4 = vpop.eup %2208 }
 0xa4e   :  { %v1352_v45 = vsel %vm196_vm2, %v2209_v4, 0.0  ;;  %v1519_v24 = vpop.permute.xlu1 %1518 }
 0xa4f   :  { %1353 = vadd.xlane.f32.xlu0 %v1352_v45  ;;  %v1539_v34 = vsel %vm196_vm2, %v2459_v30, %v1519_v24  ;;  %v1787_v24 = vld [vmem:[%s2643_s5 + $0x28] sm:$0xff] }
 0xa51   :  { %v2211_v5 = vpop.eup %2210 }
 0xa52   :  { %v1355_v6 = vsel %vm196_vm2, %v2211_v5, 0.0  ;;  %v1527_v31 = vpop.permute.xlu1 %1526 }
 0xa53   :  { %1356 = vadd.xlane.f32.xlu0 %v1355_v6  ;;  %v1542_v35 = vsel %vm1540_vm6, %v1539_v34, %v1527_v31  ;;  %v1665_v6 = vsub.s32 3, %v2370_v26  ;;  %v1789_v31 = vld [vmem:[%s2643_s5 + $0x38] sm:$0xff] }
 0xa69   :  { %1362 = vrot.lane.b32.xlu0 %v2393_v47, %s2287_s14  ;;  %v1547_v47 = vld [vmem:[%s2641_s3 + $0x8] sm:$0xff] }
 0xa6a   :  { %v2129_v15 = vpack.c.bf16 %v1547_v47, %v1546_v14 }
 0xa6d   :  { %1524 = vrot.lane.b32.xlu0 %v1104_v44, %s2288_s0 }
 0xadc   :  { %v1354_v7 = vpop.xlane.xlu0 %1353 }
 0xadd   :  { %2212 = vrcp.f32 %v1354_v7  ;;  %v1671_v7 = vsub.s32 4, %v2370_v26 }
 0xae0   :  { %v1357_v8 = vpop.xlane.xlu0 %1356 }
 0xae1   :  { %2214 = vrcp.f32 %v1357_v8  ;;  %v1666_v8 = vrot.slane %v2376_v29, %v1665_v6 }
 0xae4   :  { %v1363_v9 = vpop.permute.xlu0 %1362 }
 0xae5   :  { %2071 = vmatpush3.msra.mxu0 %v1363_v9 }
 0xae6   :  { %2130 = vmatprep.subr.bf16.mxu0 %v2129_v15 }
 0xae7   :  { %v2213_v10 = vpop.eup %2212 }
 0xae8   :  { %v1360_v11 = vmul.f32 %v2213_v10, %v2209_v4  ;;  %v1525_v25 = vpop.permute.xlu0 %1524 }
 0xae9   :  { %v1541_v32 = vsel %vm1540_vm6, %v1538_v28, %v1525_v25  ;;  %v2153_v25 = vpack.c.bf16 %v1787_v24, %v1786_v23  ;;  %v1788_v28 = vld [vmem:[%s2643_s5 + $0x30] sm:$0xff] }
 0xaea   :  { %2073 = vmatmul.mubr.msk.f32.vlgmr.msra.gmra.mrb[12].mxu0 %vm196_vm2, %v1360_v11  ;;  %v1672_v11 = vrot.slane %v2376_v29, %v1671_v7 }
 0xaeb   :  { %v2215_v12 = vpop.eup %2214  ;;  %2132 = vmatpush3.bf16.msra.mxu0 %v2129_v15 }
 0xaec   :  { %v1361_v13 = vmul.f32 %v2215_v12, %v2211_v5  ;;  %2134 = vmatprep.subr.bf16.mxu0 %v2133_v18 }
 0xaee   :  { %2078 = vmatmul.mubr.msk.f32.vlgmr.msra.gmra.mrb[18].mxu1 %vm196_vm2, %v1361_v13 }
 0xaef   :  { %2136 = vmatpush3.bf16.msra.mxu0 %v2133_v18  ;;  %2140 = vmatpush3.bf16.msra.mxu1 %v2137_v41  ;;  %v1783_v18 = vld [vmem:[%s2643_s5 + $0x8] sm:$0xff] }
 0xaf0   :  { %2142 = vmatprep.subr.bf16.mxu1 %v2141_v63 }
 0xaf3   :  { %2144 = vmatpush3.bf16.msra.mxu1 %v2141_v63 }
 0xbbd   :  { %v1434_v19 = vpop.f32.mrb[12].mxu0 }
 0xbbe   :  { %1532 = vrot.lane.b32.xlu0 %v1434_v19, %s2289_s2  ;;  %v2074_v20 = vpop.f32.mrb[13].mxu0  ;;  %v2145_v19 = vpack.c.bf16 %v1783_v18, %v1782_v17 }
 0xbbf   :  { %v1784_v20 = vld [vmem:[%s2643_s5 + $0x10] sm:$0xff] }
 0xbc0   :  { %2146 = vmatprep.subr.bf16.mxu0 %v2145_v19 }
 0xbc1   :  { %v1510_v21 = vpop.f32.mrb[18].mxu1 }
 0xbc2   :  { %1534 = vrot.lane.b32.xlu1 %v1510_v21, %s2289_s2  ;;  %v2079_v22 = vpop.f32.mrb[19].mxu1  ;;  %v1785_v21 = vld [vmem:[%s2643_s5 + $0x18] sm:$0xff]  ;;  %s2290_s5 = smov [#allocation5]  }
 0xbc3   :  { %v2149_v22 = vpack.c.bf16 %v1785_v21, %v1784_v20  ;;  %s1885_s21 = sshll.u32 %s2290_s5, 4  ;;  %s1886_s21 = int_to_ptr.vmem [resolvable:$true] %s1885_s21 }
 0xbc4   :  { %s2246_s22 = scalar_lea.vmem %s1886_s21, 256  ;;  %p2251_p9 = scmp.lt.s32.totalorder %s1886_s21, %s1886_s21 }
 0xbc5   :  { %p2247_p8 = scmp.ne.s32.totalorder %s1886_s21, %s2246_s22  ;;  %p2252_p10 = scmp.lt.s32.totalorder %s2246_s22, %s2246_s22 }
 0xbc7   :  { %p2253_p11 = por %p2252_p10, %p2251_p9 }
 0xbc9   :  { %p2254_p12 = pnand %p2253_p11, %p2247_p8 }
 0xc30   :  { %v1533_v51 = vpop.permute.xlu0 %1532 }
 0xc31   :  { %v1544_v33 = vsel %vm1543_vm5, %v1541_v32, %v1533_v51  ;;  %v2157_v32 = vpack.c.bf16 %v1789_v31, %v1788_v28  ;;  %v1681_v51 = vsub.s32 6, %v2370_v26 }
 0xc32   :  { %2088 = vmatprep.mubr.msk.f32.mxu0 %vm44_vm0, %v1544_v33 }
 0xc33   :  { %v1682_v33 = vrot.slane %v2376_v29, %v1681_v51 }
 0xc34   :  { %v1535_v36 = vpop.permute.xlu1 %1534 }
 0xc35   :  { %v1545_v37 = vsel %vm1543_vm5, %v1542_v35, %v1535_v36 }
 0xc36   :  { %2089 = vmatmul.mubr.msk.f32.vlgmr.msra.gmra.mrb[14].mxu0 %vm44_vm0, %v1545_v37 }
 0xc37   :  { %2148 = vmatpush3.bf16.msra.mxu0 %v2145_v19 }
 0xc38   :  { %2150 = vmatprep.subr.bf16.mxu0 %v2149_v22 }
 0xc3b   :  { %2152 = vmatpush3.bf16.msra.mxu0 %v2149_v22 }
 0xc3c   :  { %2154 = vmatprep.subr.bf16.mxu0 %v2153_v25 }
 0xc3f   :  { %2156 = vmatpush3.bf16.msra.mxu0 %v2153_v25 }
 0xc40   :  { %2158 = vmatprep.subr.bf16.mxu0 %v2157_v32 }
 0xc43   :  { %2160 = vmatpush3.bf16.msra.mxu0 %v2157_v32 }
 0xd09   :  { %v2090_v27 = vpop.f32.mrb[14].mxu0 }
 0xd0a   :  { %v1632_v40 = vadd.f32 %v2090_v27, %v1553_v39  ;;  %v1626_v42 = vpop.f32.mrb[15].mxu0 }
 0xd0b   :  { %v1627_v49 = vadd.f32 %v1626_v42, %v1553_v39 }
 0xd0c   :  { %v2560_v43 = vadd.f32 %v1632_v40, %v2348_v1 }
 0xd0d   :  { %v2563_v44 = vadd.f32 %v1627_v49, %v2346_v0 }
 0xd0e   :  { %v1640_v30 = vsel %vm44_vm0, %v2560_v43, 0.0 }
 0xd0f   :  { %1641 = vadd.xlane.f32.xlu1 %v1640_v30  ;;  %v1637_v46 = vsel %vm44_vm0, %v2563_v44, 0.0 }
 0xd10   :  { %1638 = vadd.xlane.f32.xlu0 %v1637_v46 }
 0xd9c   :  { %v1642_v48 = vpop.xlane.xlu1 %1641 }
 0xd9d   :  { %v1644_v50 = vmul.f32 0.03125, %v1642_v48  ;;  %v1639_v52 = vpop.xlane.xlu0 %1638 }
 0xd9e   :  { %v1643_v53 = vmul.f32 0.03125, %v1639_v52 }
 0xd9f   :  { %v1646_v54 = vsub.f32 %v2560_v43, %v1644_v50 }
 0xda0   :  { %v1645_v1 = vsub.f32 %v2563_v44, %v1643_v53 }
 0xda1   :  { %v1648_v57 = vmul.f32 %v1646_v54, %v1646_v54 }
 0xda2   :  { %v1647_v56 = vmul.f32 %v1645_v1, %v1645_v1 }
 0xda3   :  { %v1652_v58 = vsel %vm44_vm0, %v1648_v57, 0.0 }
 0xda4   :  { %v1649_v0 = vsel %vm44_vm0, %v1647_v56, 0.0 }
 0xda5   :  { %1650 = vadd.xlane.f32.xlu0 %v1649_v0 }
 0xda9   :  { %1653 = vadd.xlane.f32.xlu0 %v1652_v58 }
 0xe32   :  { %v1651_v60 = vpop.xlane.xlu0 %1650 }
 0xe33   :  { %v1655_v2 = vmul.f32 0.03125, %v1651_v60 }
 0xe35   :  { %v1657_v3 = vadd.f32 1e-06, %v1655_v2 }
 0xe36   :  { %v1654_v4 = vpop.xlane.xlu0 %1653 }
 0xe37   :  { %2216 = vrsqrt.f32 %v1657_v3  ;;  %v1656_v45 = vmul.f32 0.03125, %v1654_v4 }
 0xe39   :  { %v1658_v5 = vadd.f32 1e-06, %v1656_v45 }
 0xe3b   :  { %2218 = vrsqrt.f32 %v1658_v5 }
 0xe41   :  { %v2217_v9 = vpop.eup %2216 }
 0xe42   :  { %v1661_v10 = vmul.f32 %v2217_v9, %v1645_v1 }
 0xe44   :  { %v1667_v12 = vmul.f32 %v1666_v8, %v1661_v10 }
 0xe45   :  { %v2219_v13 = vpop.eup %2218 }
 0xe46   :  { %v1662_v14 = vmul.f32 %v2219_v13, %v1646_v54  ;;  %v1673_v47 = vadd.f32 %v1672_v11, %v1667_v12 }
 0xe48   :  { %v1668_v15 = vmul.f32 %v1666_v8, %v1662_v14  ;;  %2099 = vmatprep.mubr.msk.f32.mxu1 %vm44_vm0, %v1673_v47 }
 0xe4a   :  { %v1674_v16 = vadd.f32 %v1672_v11, %v1668_v15 }
 0xe4c   :  { %2100 = vmatmul.mubr.msk.f32.vlgmr.msra.gmra.mrb[20].mxu1 %vm44_vm0, %v1674_v16 }
 0xf1f   :  { %v2101_v34 = vpop.f32.mrb[20].mxu1 }
 0xf20   :  { %v1761_v35 = vadd.f32 %v2101_v34, %v1682_v33  ;;  %v1755_v36 = vpop.f32.mrb[21].mxu1 }
 0xf21   :  { %v1756_v37 = vadd.f32 %v1755_v36, %v1682_v33 }
 0xf22   :  { %v1767_v38 = vmul.f32 %v1761_v35, %v1761_v35  ;;  %v1765_v0 = vmul.f32 0.5, %v1761_v35 }
 0xf23   :  { %v1766_v39 = vmul.f32 %v1756_v37, %v1756_v37  ;;  %v1764_v1 = vmul.f32 0.5, %v1756_v37 }
 0xf24   :  { %v1769_v27 = vmul.f32 %v1767_v38, %v1761_v35 }
 0xf25   :  { %v1768_v40 = vmul.f32 %v1766_v39, %v1756_v37 }
 0xf26   :  { %v1771_v42 = vmul.f32 0.044715, %v1769_v27 }
 0xf27   :  { %v1770_v49 = vmul.f32 0.044715, %v1768_v40 }
 0xf28   :  { %v1773_v30 = vadd.f32 %v1771_v42, %v1761_v35 }
 0xf29   :  { %v1772_v46 = vadd.f32 %v1770_v49, %v1756_v37 }
 0xf2a   :  { %v1775_v48 = vmul.f32 0.7978846, %v1773_v30 }
 0xf2b   :  { %v1774_v50 = vmul.f32 0.7978846, %v1772_v46 }
 0xf2c   :  { %2220 = vtanh.f32 %v1775_v48 }
 0xf2d   :  { %2222 = vtanh.f32 %v1774_v50 }
 0xf36   :  { %v2221_v52 = vpop.eup %2220 }
 0xf37   :  { %v2223_v53 = vpop.eup %2222  ;;  %v1779_v54 = vadd.f32 1.0, %v2221_v52 }
 0xf38   :  { %v1778_v56 = vadd.f32 1.0, %v2223_v53 }
 0xf39   :  { %v1781_v58 = vmul.f32 %v1779_v54, %v1765_v0 }
 0xf3a   :  { %v1780_v57 = vmul.f32 %v1778_v56, %v1764_v1 }
 0xf3c   :  { %2118 = vmatprep.mubr.msk.f32.mxu0 %vm1794_vm7, %v1780_v57 }
 0xf3d   :  { %2119 = vmatmul.mubr.msk.f32.vlgmr.msra.gmra.mrb[16].mxu0 %vm1794_vm7, %v1781_v58 }
0x1010   :  { %v2120_v41 = vpop.f32.mrb[16].mxu0 }
0x1011   :  { %v1873_v55 = vadd.f32 %v2120_v41, %v1793_v61  ;;  %v1867_v62 = vpop.f32.mrb[17].mxu0 }
0x1012   :  { %v1868_v63 = vadd.f32 %v1867_v62, %v1793_v61 }
0x1013   :  { %v1877_v60 = vadd.f32 %v1873_v55, %v2560_v43 }
0x1014   :  { %v1876_v2 = vadd.f32 %v1868_v63, %v2563_v44 }
0x1015   :  { %1879 = vst.msk [vmem:[#allocation5 + $0x8] sm:$0xff] %vm44_vm0, %v1877_v60 }
0x1016   :  { %1878 = vst.msk [vmem:[#allocation5] sm:$0xff] %vm44_vm0, %v1876_v2 }
0x1017   :  { %2257 = shalt.err (!%p2254_p12)
}
0x1018   :  { %s2258_s6 = scalar_lea.hbm %s2645_s7, 256 }
0x1019   :  { %p2259_p13 = scmp.ne.s32.totalorder %s2645_s7, %s2258_s6  ;;  %p2262_p0 = scmp.lt.u32.totalorder %s2258_s6, %s2645_s7 }
0x101b   :  { %p2264_p1 = pnand %p2262_p0, %p2259_p13 }
0x101d   :  { %2267 = shalt.err (!%p2264_p1)
}
0x101e   :  { %1891 = dma.vmem_to_hbm [thread:$0]  %s1886_s21, 256, %s2645_s7, [#allocation4], %s2273_s11, %s2273_s11, %s2274_s12  }
0x101f   :  { %2270 = dma.done.wait [#allocation4], 256  }
0x1020   :  { %2271 = vsyncadd [#allocation4], 4294967040 }
0x1021   :  { %1895 = vsyncpa [#allocation3], 1 }
0x1022   :  { %1896 = vsyncpa [#allocation4], 1 }

</bundles_post_ra>
